<compile_context>
chip_gen: v6e
topology: v6e:2x2x1
jax: 0.10.0
libtpu: 0.0.40
codegen_flags: <defaults>
</compile_context>

<pallas_src>
import functools

import jax
import jax.numpy as jnp
from jax.experimental import pallas as pl
from jax.experimental.pallas import tpu as pltpu

LANES = 128
SUBLANES = 8
TM_MAX = 4096  # rows per grid step: 4096*128*4B = 2 MiB f32 per input block


def _silog_partial_kernel(x_ref, t_ref, sum_ref, sq_ref, *, valid_rows):
    """Per-block partial sums: emits (8,128) sum(g) and sum(g*g).

    No scratch, no pl.when, no cross-step state -> the grid axis is fully
    parallel.  Only VPU adds inside (reshape folds (TM,128) onto vreg-shaped
    (8,128) strips); no cross-lane/sublane XLU work in the hot path.
    """
    alpha = jnp.float32(1e-10)
    x = x_ref[...].astype(jnp.float32)
    t = t_ref[...].astype(jnp.float32)

    if valid_rows is not None:
        # Ragged row tail of the last block: mask BEFORE the logs so garbage in
        # the OOB region of the buffer can never produce NaN/Inf; ones give
        # g == 0 exactly, so masked rows contribute nothing.
        tile_rows = x.shape[0]
        row0 = pl.program_id(0) * tile_rows
        rid = jax.lax.broadcasted_iota(jnp.int32, x.shape, 0) + row0
        valid = rid < valid_rows
        one = jnp.float32(1.0)
        x = jnp.where(valid, x, one)
        t = jnp.where(valid, t, one)

    # NOTE: if the single EUP slot ever binds (v7x at 3.2 TB/s with bf16
    # inputs), trade one log for a divide: g = log((x+alpha)/(t+alpha)).
    g = jnp.log(x + alpha) - jnp.log(t + alpha)

    gf = g.reshape(-1, SUBLANES, LANES)
    sum_ref[...] = jnp.sum(gf, axis=0).reshape(1, SUBLANES, LANES)
    sq_ref[...] = jnp.sum(gf * gf, axis=0).reshape(1, SUBLANES, LANES)


@functools.partial(jax.jit, static_argnames=("beta",))
def _silog_loss_impl(inp, target, beta):
    n_total = inp.size
    x = jnp.ravel(inp)
    t = jnp.ravel(target)

    # Pad only the lane tail (< 128 elems) with ones so the flat array reshapes
    # to (rows, 128); ones give g == 0, so they contribute nothing (true n_total
    # is used in the denominators).  Most image tensors hit rem == 0 (no copy).
    # TODO(synk): for n_total % 128 != 0 this still copies the flat array; a
    #   separate JAX-side tail reduction would remove even that copy.
    rem = n_total % LANES
    if rem:
        pad = LANES - rem
        x = jnp.concatenate([x, jnp.ones((pad,), x.dtype)])
        t = jnp.concatenate([t, jnp.ones((pad,), t.dtype)])

    rows = x.size // LANES
    x2 = x.reshape(rows, LANES)
    t2 = t.reshape(rows, LANES)

    # Tile selection: one block if it fits, else TM_MAX-row blocks.  tile_rows
    # is always a multiple of 8 so the in-kernel (…,8,128) fold is layout-clean.
    if rows <= TM_MAX:
        tile_rows = ((rows + SUBLANES - 1) // SUBLANES) * SUBLANES
    else:
        tile_rows = TM_MAX
    grid_n = pl.cdiv(rows, tile_rows)
    # Static flag: does the last block have a ragged row tail to mask?
    valid_rows = rows if rows != grid_n * tile_rows else None

    kernel = functools.partial(_silog_partial_kernel, valid_rows=valid_rows)

    itemsize = jnp.dtype(inp.dtype).itemsize
    cost = pl.CostEstimate(
        flops=6 * n_total,
        transcendentals=2 * n_total,
        bytes_accessed=2 * n_total * itemsize
        + 2 * grid_n * SUBLANES * LANES * 4,
    )

    psum, psq = pl.pallas_call(
        kernel,
        out_shape=(
            jax.ShapeDtypeStruct((grid_n, SUBLANES, LANES), jnp.float32),
            jax.ShapeDtypeStruct((grid_n, SUBLANES, LANES), jnp.float32),
        ),
        grid_spec=pltpu.PrefetchScalarGridSpec(
            num_scalar_prefetch=0,
            grid=(grid_n,),
            in_specs=[
                pl.BlockSpec((tile_rows, LANES), lambda i: (i, 0)),
                pl.BlockSpec((tile_rows, LANES), lambda i: (i, 0)),
            ],
            out_specs=(
                pl.BlockSpec((1, SUBLANES, LANES), lambda i: (i, 0, 0)),
                pl.BlockSpec((1, SUBLANES, LANES), lambda i: (i, 0, 0)),
            ),
        ),
        compiler_params=pltpu.CompilerParams(
            dimension_semantics=("parallel",),
            vmem_limit_bytes=32 * 1024 * 1024,
        ),
        cost_estimate=cost,
    )(x2, t2)

    # Tiny finalize, fused into the same jit program (negligible next to the
    # streaming kernel).  Single-pass variance: fine at these sizes; a Welford
    # pass would be needed only for huge N with |mean| >> std.
    n = jnp.float32(n_total)
    s = jnp.sum(psum)
    sq = jnp.sum(psq)
    mean = s / n
    var = (sq - s * s / n) / (n - 1.0)  # unbiased, matches torch.var default
    dg = jnp.maximum(var + jnp.float32(beta) * mean * mean, 0.0)
    return 10.0 * jnp.sqrt(dg)


def silog_loss(inp, target, beta=0.15):
    assert inp.shape == target.shape
    return _silog_loss_impl(inp, target, beta=float(beta))


def silog_loss_ref(inp, target, beta=0.15):
    alpha = 1e-10
    g = jnp.log(inp.astype(jnp.float32) + alpha) - jnp.log(
        target.astype(jnp.float32) + alpha)
    dg = jnp.var(g, ddof=1) + beta * jnp.mean(g) ** 2
    return 10.0 * jnp.sqrt(dg)


if __name__ == "__main__":
    key = jax.random.PRNGKey(0)
    k1, k2 = jax.random.split(key)
    shape = (2, 4, 16, 16)  # NCHW, like the PyTorch module's depth maps
    # positive depth-like inputs
    pred = jax.random.uniform(k1, shape, jnp.float32, minval=0.1, maxval=10.0)
    gt = jax.random.uniform(k2, shape, jnp.float32, minval=0.1, maxval=10.0)

    loss = silog_loss(pred, gt)
    jax.block_until_ready(loss)

    ref = silog_loss_ref(pred, gt)
    assert jnp.allclose(loss, ref, rtol=1e-5, atol=1e-5), (loss, ref)
    print("KERNEL_OK")
</pallas_src>

<mosaic_0001>
module attributes {stable_mosaic.version = 11 : i64} {
  func.func @_silog_partial_kernel(%arg0: i32, %arg1: memref<16x128xf32, #tpu.memory_space<vmem>>, %arg2: memref<16x128xf32, #tpu.memory_space<vmem>>, %arg3: memref<1x8x128xf32, #tpu.memory_space<vmem>>, %arg4: memref<1x8x128xf32, #tpu.memory_space<vmem>>) attributes {dimension_semantics = [#tpu.dimension_semantics<parallel>], iteration_bounds = array<i64: 1>, scalar_prefetch = 0 : i64, scratch_operands = 0 : i64, tpu.core_type = #tpu.core_type<tc>, window_params = [{transform_indices = @transform_0, window_bounds = array<i64: 16, 128>}, {transform_indices = @transform_1, window_bounds = array<i64: 16, 128>}, {transform_indices = @transform_2, window_bounds = array<i64: 1, 8, 128>}, {transform_indices = @transform_3, window_bounds = array<i64: 1, 8, 128>}]} {
    %c0 = arith.constant 0 : index
    %c0_0 = arith.constant 0 : index
    %0 = vector.load %arg1[%c0, %c0_0] : memref<16x128xf32, #tpu.memory_space<vmem>>, vector<16x128xf32>
    %c0_1 = arith.constant 0 : index
    %c0_2 = arith.constant 0 : index
    %1 = vector.load %arg2[%c0_1, %c0_2] : memref<16x128xf32, #tpu.memory_space<vmem>>, vector<16x128xf32>
    %cst = arith.constant 1.000000e-10 : f32
    %2 = vector.broadcast %cst : f32 to vector<16x128xf32>
    %3 = arith.addf %0, %2 : vector<16x128xf32>
    %4 = math.log %3 : vector<16x128xf32>
    %cst_3 = arith.constant 1.000000e-10 : f32
    %5 = vector.broadcast %cst_3 : f32 to vector<16x128xf32>
    %6 = arith.addf %1, %5 : vector<16x128xf32>
    %7 = math.log %6 : vector<16x128xf32>
    %8 = arith.subf %4, %7 : vector<16x128xf32>
    %9 = vector.shape_cast %8 : vector<16x128xf32> to vector<2x8x128xf32>
    %cst_4 = arith.constant dense<0.000000e+00> : vector<8x128xf32>
    %10 = vector.multi_reduction <add>, %9, %cst_4 [0] : vector<2x8x128xf32> to vector<8x128xf32>
    %11 = vector.shape_cast %10 : vector<8x128xf32> to vector<1x8x128xf32>
    %c0_5 = arith.constant 0 : index
    %c0_6 = arith.constant 0 : index
    %c0_7 = arith.constant 0 : index
    %12 = vector.load %arg3[%c0_5, %c0_6, %c0_7] : memref<1x8x128xf32, #tpu.memory_space<vmem>>, vector<1x8x128xf32>
    tpu.vector_store %arg3[%c0_5, %c0_6, %c0_7], %11 {strides = array<i32>} : memref<1x8x128xf32, #tpu.memory_space<vmem>>, vector<1x8x128xf32>,
    %13 = arith.mulf %9, %9 : vector<2x8x128xf32>
    %cst_8 = arith.constant dense<0.000000e+00> : vector<8x128xf32>
    %14 = vector.multi_reduction <add>, %13, %cst_8 [0] : vector<2x8x128xf32> to vector<8x128xf32>
    %15 = vector.shape_cast %14 : vector<8x128xf32> to vector<1x8x128xf32>
    %c0_9 = arith.constant 0 : index
    %c0_10 = arith.constant 0 : index
    %c0_11 = arith.constant 0 : index
    %16 = vector.load %arg4[%c0_9, %c0_10, %c0_11] : memref<1x8x128xf32, #tpu.memory_space<vmem>>, vector<1x8x128xf32>
    tpu.vector_store %arg4[%c0_9, %c0_10, %c0_11], %15 {strides = array<i32>} : memref<1x8x128xf32, #tpu.memory_space<vmem>>, vector<1x8x128xf32>,
    return
  }
  func.func @transform_0(%arg0: i32) -> (i32, i32) {
    %c0_i32 = arith.constant 0 : i32
    %c0_i32_0 = arith.constant 0 : i32
    return %arg0, %c0_i32 : i32, i32
  }
  func.func @transform_1(%arg0: i32) -> (i32, i32) {
    %c0_i32 = arith.constant 0 : i32
    %c0_i32_0 = arith.constant 0 : i32
    return %arg0, %c0_i32 : i32, i32
  }
  func.func @transform_2(%arg0: i32) -> (i32, i32, i32) {
    %c0_i32 = arith.constant 0 : i32
    %c0_i32_0 = arith.constant 0 : i32
    %c0_i32_1 = arith.constant 0 : i32
    return %arg0, %c0_i32, %c0_i32_0 : i32, i32, i32
  }
  func.func @transform_3(%arg0: i32) -> (i32, i32, i32) {
    %c0_i32 = arith.constant 0 : i32
    %c0_i32_0 = arith.constant 0 : i32
    %c0_i32_1 = arith.constant 0 : i32
    return %arg0, %c0_i32, %c0_i32_0 : i32, i32, i32
  }
}

</mosaic_0001>

<bundles_post_ra>
// kernel: _silog_loss_impl.1
= control target key start
LH: loop header
LB: loop body
LE: loop exit
PB: predicated region body
PF: predicated region fallthrough
CT: control target
= control target key end

     0   :  { %s91_s0 = inlined_call_operand.vmem [shape: f32[16,128], index: 0, kind: input, shape index: {}]   ;;  %s92_s1 = inlined_call_operand.vmem [shape: f32[16,128], index: 1, kind: input, shape index: {}]   ;;  %s93_s2 = inlined_call_operand.vmem [shape: f32[1,8,128], index: 2, kind: output, shape index: {0}]   ;;  %s94_s3 = inlined_call_operand.vmem [shape: f32[1,8,128], index: 3, kind: output, shape index: {1}]  }
   0x1   :  { %v13_v0 = vld [vmem:[%s91_s0] sm:$0xff]  ;;  %v14_v1 = vld [vmem:[%s91_s0 + $0x8] sm:$0xff] }
   0x2   :  { %v15_v2 = vld [vmem:[%s92_s1] sm:$0xff]  ;;  %v16_v3 = vld [vmem:[%s92_s1 + $0x8] sm:$0xff]  ;;  %v17_v4 = vadd.f32 1e-10, %v13_v0  ;;  %v18_v5 = vadd.f32 1e-10, %v14_v1 }
   0x3   :  { %v23_v6 = vadd.f32 1e-10, %v15_v2  ;;  %v24_v7 = vadd.f32 1e-10, %v16_v3 }
   0x4   :  { %45 = vlog2.f32 %v17_v4 }
   0x5   :  { %47 = vlog2.f32 %v18_v5 }
   0x6   :  { %49 = vlog2.f32 %v23_v6 }
   0x7   :  { %51 = vlog2.f32 %v24_v7 }
  0x11   :  { %v46_v8 = vpop.eup %45 }
  0x12   :  { %v48_v9 = vpop.eup %47  ;;  %v20_v10 = vmul.f32 0.6931472, %v46_v8 }
  0x13   :  { %v50_v11 = vpop.eup %49  ;;  %v22_v12 = vmul.f32 0.6931472, %v48_v9 }
  0x14   :  { %v52_v13 = vpop.eup %51  ;;  %v26_v14 = vmul.f32 0.6931472, %v50_v11 }
  0x15   :  { %v28_v15 = vmul.f32 0.6931472, %v52_v13 }
  0x16   :  { %v29_v16 = vsub.f32 %v20_v10, %v26_v14 }
  0x17   :  { %v30_v17 = vsub.f32 %v22_v12, %v28_v15 }
  0x18   :  { %v33_v18 = vmul.f32 %v29_v16, %v29_v16 }
  0x19   :  { %v31_v19 = vadd.f32 %v30_v17, %v29_v16  ;;  %v34_v20 = vmul.f32 %v30_v17, %v30_v17 }
  0x1b   :  { %32 = vst [vmem:[%s93_s2] sm:$0xff] %v31_v19  ;;  %v35_v21 = vadd.f32 %v34_v20, %v33_v18 }
  0x1d   :  { %36 = vst [vmem:[%s94_s3] sm:$0xff] %v35_v21 }

</bundles_post_ra>
